<compile_context>
chip_gen: v7x
topology: tpu7x:2x2x1
jax: 0.10.0
libtpu: 0.0.40
codegen_flags: <defaults>
</compile_context>

<pallas_src>
import functools

import jax
import jax.numpy as jnp
from jax.experimental import pallas as pl
from jax.experimental.pallas import tpu as pltpu

# ---- HypAgg hyper-parameters (deterministic, set in-script) ----
C = 1.0                  # curvature
SQRT_C = C ** 0.5
INV_SQRT_C = 1.0 / SQRT_C
MIN_NORM = 1e-15         # manifold.min_norm
MAX_NORM = 1e6           # manifold.max_norm (upper clamp on aggregated tangents)
BALL_EPS = 4e-3          # PoincareBall eps for float32 in hgcn
DROPOUT = 0.0            # only used inside DenseAtt (use_att=True path)
# float32-meaningful artanh clamp: 1 - 1e-15 rounds to 1.0 in f32 and would let
# log1p(-v) hit -inf for points on/outside the ball.  Never active for inputs
# that are proj()'d inside the ball (||x|| <= (1-4e-3)/sqrt(c)); behavioral
# difference from the torch reference only for unprojected inputs.
ARTANH_CLAMP = 1.0 - 1e-7
# TODO(synk): use_att=True / local_agg branches need DenseAtt and
# manifold.logmap(x_i, x), which are not defined in the provided module; only
# the default torch.spmm(adj, x_tangent) path is implemented.


def _round_up(a, b):
    return ((a + b - 1) // b) * b


def _largest_divisor_leq(n, cap):
    """Largest divisor of n that is <= cap (cap is small, e.g. <= 32)."""
    cap = max(1, min(n, cap))
    for d in range(cap, 0, -1):
        if n % d == 0:
            return d
    return 1


def _device_kind():
    try:
        return jax.devices()[0].device_kind.lower()
    except Exception:
        return ""


# ---------------------------------------------------------------------------
# Stage 1: logmap0 — hoisted out of the K loop so artanh/log1p run once per row.
# Reads raw (N, D) f32 x, writes zero-padded (NP, DP) bf16 x_tangent directly
# (halves the matmul's x_tan bytes; native MXU input dtype).
# ---------------------------------------------------------------------------
def _logmap0_kernel(x_ref, xt_ref, *, d, dp):
    x = x_ref[...].astype(jnp.float32)                          # (TL, d)
    xn = jnp.sqrt(jnp.sum(x * x, axis=-1, keepdims=True))
    xn = jnp.maximum(xn, MIN_NORM)
    v = jnp.clip(SQRT_C * xn, -ARTANH_CLAMP, ARTANH_CLAMP)
    artanh = 0.5 * (jnp.log1p(v) - jnp.log1p(-v))               # EUP
    scale = artanh * pl.reciprocal(SQRT_C * xn, approx=False)   # exact: feeds bf16 quantization
    xt = (scale * x).astype(xt_ref.dtype)                       # (TL, d) bf16
    if d == dp:
        xt_ref[...] = xt
    else:
        # Zero-fill the padded lanes, then a masked store of the real columns.
        xt_ref[...] = jnp.zeros_like(xt_ref)
        xt_ref[:, :d] = xt


# ---------------------------------------------------------------------------
# Stage 2: tiled, pipelined aggregation + expmap0 + proj.
#   grid = (rows//TM, cols//TK); adj (TM,TK) tiles stream from HBM (cast to bf16
#   in-VMEM), x_tangent is fully VMEM-resident and sliced per k, accumulation
#   goes directly into the f32 output block; epilogue on the last k step.
# ---------------------------------------------------------------------------
def _hypagg_kernel(adj_ref, xt_ref, out_ref, *, tk):
    k = pl.program_id(1)

    @pl.when(k == 0)
    def _():
        out_ref[...] = jnp.zeros_like(out_ref)

    a = adj_ref[...].astype(jnp.bfloat16)                       # in-VMEM cast (no HBM pre-pass)
    start = pl.multiple_of(k * tk, tk)
    xk = xt_ref[pl.ds(start, tk), :]                            # resident x_tan slice
    out_ref[...] += jnp.dot(a, xk, preferred_element_type=jnp.float32)

    @pl.when(k == pl.num_programs(1) - 1)
    def _():
        # torch.clamp(spmm(adj, x_tangent), max=MAX_NORM)  (upper clamp only)
        support = jnp.minimum(out_ref[...], MAX_NORM)
        # proj_tan0 is the identity on the Poincare ball.
        u_norm = jnp.sqrt(jnp.sum(support * support, axis=-1, keepdims=True))
        # Padded (all-zero) rows: u_norm clamps to MIN_NORM, row_scale ~ 1, so they
        # stay exactly zero and are sliced away by the wrapper.
        u_norm = jnp.maximum(u_norm, MIN_NORM)
        inv_un = pl.reciprocal(u_norm, approx=True)             # EUP slot, ~free
        # expmap0 + proj fused into one per-row scale:
        #   gamma     = tanh(sqrt_c*||u||) * u / (sqrt_c*||u||)
        #   ||gamma|| = tanh(sqrt_c*||u||)/sqrt_c        (analytic, no 2nd reduce)
        #   proj(g)   = g * max_r/||g||  if ||g|| > max_r else g
        max_r = (1.0 - BALL_EPS) * INV_SQRT_C
        g_norm = jnp.tanh(SQRT_C * u_norm) * INV_SQRT_C
        row_scale = jnp.minimum(g_norm, max_r) * inv_un
        out_ref[...] = (support * row_scale).astype(out_ref.dtype)


def hyp_agg(x, adj, *, tm=None, tk=None):
    """HypAgg forward (use_att=False): proj(expmap0(clamp(adj @ logmap0(x)))).

    adj may be f32 (cast to bf16 in-VMEM, no pre-pass) or already bf16 (halves the
    kernel's adjacency HBM read).  tm/tk, if given, act as upper bounds and are
    snapped to 128-multiples that divide round_up(N, 128).
    """
    N, D = x.shape
    assert adj.shape == (N, N)

    is_v7 = ("v7" in _device_kind()) or ("7x" in _device_kind())

    # Lane-dense feature dim: pad D up to a multiple of 128 (inside stage 1) so the
    # output store path and all row-wise VPU/XLU work use full vregs.
    DP = _round_up(max(D, 128), 128)
    n128 = _round_up(N, 128)
    nblk = n128 // 128

    # Row/col padding only when N is not already a multiple of 128 (cheap & rare).
    if n128 != N:
        x_in = jnp.zeros((n128, D), x.dtype).at[:N, :].set(x)
        adj_in = jnp.zeros((n128, n128), adj.dtype).at[:N, :N].set(adj)
    else:
        x_in, adj_in = x, adj

    # --- tile selection (divisors of n128; no lcm padding) ---
    tm_blocks_cap = max(1, (tm if tm is not None else 512) // 128)
    if tm is None and nblk >= 2:
        # Keep >=2 row tiles so "parallel" can shard rows across v7x's 2 TensorCores.
        tm_blocks_cap = min(tm_blocks_cap, max(1, nblk // 2))
    tm_ = _largest_divisor_leq(nblk, tm_blocks_cap) * 128

    adj_item = jnp.dtype(adj_in.dtype).itemsize
    budget = (48 << 20) if is_v7 else (100 << 20)          # scoped-VMEM budget
    xtan_bytes = 2 * n128 * DP * 2                          # resident bf16 x_tan (2 bufs)
    out_bytes = 2 * tm_ * DP * 4                            # f32 output block (2 bufs)
    avail = int(0.75 * budget) - xtan_bytes - out_bytes
    tk_cap = tk if tk is not None else 4096
    if avail > 0:
        tk_cap = min(tk_cap, max(128, (avail // (2 * tm_ * adj_item)) // 128 * 128))
    tk_ = _largest_divisor_leq(nblk, max(1, tk_cap // 128)) * 128

    est = 2 * tm_ * tk_ * adj_item + xtan_bytes + out_bytes
    vmem_limit = int(min(budget, max(2 * est, 16 << 20)))

    # --- stage 1: x_tangent = logmap0(x, c), zero-padded bf16 (n128, DP) ---
    x_tan = pl.pallas_call(
        functools.partial(_logmap0_kernel, d=D, dp=DP),
        out_shape=jax.ShapeDtypeStruct((n128, DP), jnp.bfloat16),
        grid=(n128 // tm_,),
        in_specs=[pl.BlockSpec((tm_, D), lambda i: (i, 0))],
        out_specs=pl.BlockSpec((tm_, DP), lambda i: (i, 0)),
        compiler_params=pltpu.CompilerParams(
            dimension_semantics=("parallel",)),
    )(x_in)

    # --- stage 2: tiled aggregation + expmap0 + proj ---
    # x_tan uses a full-array block with a constant index_map -> it is DMA'd into
    # VMEM exactly once for the whole grid (no re-streaming per row tile); the
    # second (unused) pipeline buffer is tiny and harmless.
    out = pl.pallas_call(
        functools.partial(_hypagg_kernel, tk=tk_),
        out_shape=jax.ShapeDtypeStruct((n128, DP), jnp.float32),
        grid=(n128 // tm_, n128 // tk_),
        in_specs=[
            pl.BlockSpec((tm_, tk_), lambda i, k: (i, k)),     # adj, streamed
            pl.BlockSpec((n128, DP), lambda i, k: (0, 0)),     # x_tan, VMEM-resident
        ],
        out_specs=pl.BlockSpec((tm_, DP), lambda i, k: (i, 0)),
        compiler_params=pltpu.CompilerParams(
            dimension_semantics=("parallel", "arbitrary"),
            vmem_limit_bytes=vmem_limit),
    )(adj_in, x_tan)

    return out[:N, :D].astype(x.dtype)


def hyp_agg_reference(x, adj, quantize_matmul_bf16=False):
    """Pure-JAX reference. If quantize_matmul_bf16, mirror the kernel's bf16
    matmul inputs (f32 accumulation) for a tight numerical comparison."""
    x = x.astype(jnp.float32)
    adj = adj.astype(jnp.float32)
    xn = jnp.maximum(jnp.linalg.norm(x, axis=-1, keepdims=True), MIN_NORM)
    v = jnp.clip(SQRT_C * xn, -ARTANH_CLAMP, ARTANH_CLAMP)
    x_tan = 0.5 * (jnp.log1p(v) - jnp.log1p(-v)) / (SQRT_C * xn) * x
    if quantize_matmul_bf16:
        adj = adj.astype(jnp.bfloat16)
        x_tan = x_tan.astype(jnp.bfloat16)
    support = jnp.minimum(
        jnp.dot(adj, x_tan, preferred_element_type=jnp.float32), MAX_NORM)
    un = jnp.maximum(jnp.linalg.norm(support, axis=-1, keepdims=True), MIN_NORM)
    gamma = jnp.tanh(SQRT_C * un) * support / (SQRT_C * un)
    gn = jnp.maximum(jnp.linalg.norm(gamma, axis=-1, keepdims=True), MIN_NORM)
    max_r = (1.0 - BALL_EPS) / SQRT_C
    return jnp.where(gn > max_r, gamma / gn * max_r, gamma)


if __name__ == "__main__":
    key = jax.random.PRNGKey(0)
    N, D = 384, 32  # num_nodes, in_features

    kx, ka = jax.random.split(key)
    # Points strictly inside the Poincare ball (||x|| < 1/sqrt(c)).
    raw = jax.random.normal(kx, (N, D), dtype=jnp.float32)
    raw_norm = jnp.linalg.norm(raw, axis=-1, keepdims=True)
    x = 0.3 * raw / jnp.maximum(raw_norm, 1e-6)

    # Dense, row-normalized random adjacency (self-loops included).
    a = (jax.random.uniform(ka, (N, N)) < 0.05).astype(jnp.float32)
    a = a + jnp.eye(N, dtype=jnp.float32)
    adj = a / jnp.sum(a, axis=-1, keepdims=True)

    # Default (auto-sized) tiles, and explicit small tiles so the test also
    # exercises a multi-tile (3, 3) grid with real k-accumulation + epilogue gating.
    out_default = jax.block_until_ready(hyp_agg(x, adj))
    out_tiled = jax.block_until_ready(hyp_agg(x, adj, tm=128, tk=128))

    ref_exact = hyp_agg_reference(x, adj)
    ref_bf16 = hyp_agg_reference(x, adj, quantize_matmul_bf16=True)

    for out in (out_default, out_tiled):
        assert out.shape == (N, D)
        assert bool(jnp.all(jnp.isfinite(out)))
        # Tight check vs the reference that matches the kernel's bf16 matmul inputs
        # (tolerance covers the approx-EUP reciprocal in the epilogue).
        assert jnp.allclose(out, ref_bf16, atol=1e-3, rtol=1e-3)
        # Loose check vs the full-f32 reference (bf16 matmul-input quantization only).
        assert jnp.allclose(out, ref_exact, atol=5e-3, rtol=5e-3)
    print("KERNEL_OK")
</pallas_src>

<mosaic_0001>
module attributes {stable_mosaic.version = 11 : i64} {
  func.func @_logmap0_kernel(%arg0: i32, %arg1: memref<128x32xf32, #tpu.memory_space<vmem>>, %arg2: memref<128x128xbf16, #tpu.memory_space<vmem>>) attributes {dimension_semantics = [#tpu.dimension_semantics<parallel>], iteration_bounds = array<i64: 3>, scalar_prefetch = 0 : i64, scratch_operands = 0 : i64, tpu.core_type = #tpu.core_type<tc>, window_params = [{transform_indices = @transform_0, window_bounds = array<i64: 128, 32>}, {transform_indices = @transform_1, window_bounds = array<i64: 128, 128>}]} {
    %c0 = arith.constant 0 : index
    %c0_0 = arith.constant 0 : index
    %0 = vector.load %arg1[%c0, %c0_0] : memref<128x32xf32, #tpu.memory_space<vmem>>, vector<128x32xf32>
    %1 = arith.mulf %0, %0 : vector<128x32xf32>
    %cst = arith.constant dense<0.000000e+00> : vector<128xf32>
    %2 = vector.multi_reduction <add>, %1, %cst [1] : vector<128x32xf32> to vector<128xf32>
    %3 = vector.shape_cast %2 : vector<128xf32> to vector<128x1xf32>
    %4 = math.sqrt %3 : vector<128x1xf32>
    %cst_1 = arith.constant 1.000000e-15 : f32
    %5 = vector.broadcast %cst_1 : f32 to vector<128x1xf32>
    %6 = arith.maximumf %4, %5 : vector<128x1xf32>
    %cst_2 = arith.constant 1.000000e+00 : f32
    %7 = vector.broadcast %cst_2 : f32 to vector<128x1xf32>
    %8 = arith.mulf %7, %6 : vector<128x1xf32>
    %cst_3 = arith.constant -0.99999988 : f32
    %cst_4 = arith.constant 0.99999988 : f32
    %9 = vector.broadcast %cst_3 : f32 to vector<128x1xf32>
    %10 = arith.maximumf %9, %8 : vector<128x1xf32>
    %11 = vector.broadcast %cst_4 : f32 to vector<128x1xf32>
    %12 = arith.minimumf %11, %10 : vector<128x1xf32>
    %13 = math.log1p %12 : vector<128x1xf32>
    %cst_5 = arith.constant 0.000000e+00 : f32
    %14 = vector.broadcast %cst_5 : f32 to vector<128x1xf32>
    %15 = arith.subf %14, %12 : vector<128x1xf32>
    %16 = math.log1p %15 : vector<128x1xf32>
    %17 = arith.subf %13, %16 : vector<128x1xf32>
    %cst_6 = arith.constant 5.000000e-01 : f32
    %18 = vector.broadcast %cst_6 : f32 to vector<128x1xf32>
    %19 = arith.mulf %18, %17 : vector<128x1xf32>
    %cst_7 = arith.constant 1.000000e+00 : f32
    %20 = vector.broadcast %cst_7 : f32 to vector<128x1xf32>
    %21 = arith.mulf %20, %6 : vector<128x1xf32>
    %22 = tpu.reciprocal %21 : vector<128x1xf32> -> vector<128x1xf32>
    %23 = arith.mulf %19, %22 : vector<128x1xf32>
    %24 = vector.broadcast %23 : vector<128x1xf32> to vector<128x32xf32>
    %25 = arith.mulf %24, %0 : vector<128x32xf32>
    %26 = arith.truncf %25 : vector<128x32xf32> to vector<128x32xbf16>
    %cst_8 = arith.constant 0.000000e+00 : bf16
    %27 = vector.broadcast %cst_8 : bf16 to vector<128x128xbf16>
    %c0_9 = arith.constant 0 : index
    %c0_10 = arith.constant 0 : index
    %28 = vector.load %arg2[%c0_9, %c0_10] : memref<128x128xbf16, #tpu.memory_space<vmem>>, vector<128x128xbf16>
    tpu.vector_store %arg2[%c0_9, %c0_10], %27 {strides = array<i32>} : memref<128x128xbf16, #tpu.memory_space<vmem>>, vector<128x128xbf16>,
    %c0_11 = arith.constant 0 : index
    %c0_12 = arith.constant 0 : index
    %29 = vector.load %arg2[%c0_11, %c0_12] : memref<128x128xbf16, #tpu.memory_space<vmem>>, vector<128x32xbf16>
    tpu.vector_store %arg2[%c0_11, %c0_12], %26 {strides = array<i32>} : memref<128x128xbf16, #tpu.memory_space<vmem>>, vector<128x32xbf16>,
    return
  }
  func.func @transform_0(%arg0: i32) -> (i32, i32) {
    %c0_i32 = arith.constant 0 : i32
    %c0_i32_0 = arith.constant 0 : i32
    return %arg0, %c0_i32 : i32, i32
  }
  func.func @transform_1(%arg0: i32) -> (i32, i32) {
    %c0_i32 = arith.constant 0 : i32
    %c0_i32_0 = arith.constant 0 : i32
    return %arg0, %c0_i32 : i32, i32
  }
}

</mosaic_0001>

<bundles_post_ra>
// kernel: tpu_custom_call.1
= control target key start
LH: loop header
LB: loop body
LE: loop exit
PB: predicated region body
PF: predicated region fallthrough
CT: control target
= control target key end

     0   :  { %6 = vsyncpa [#allocation3], 0  ;;  %s2019_s0 = inlined_call_operand.vmem [shape: f32[384,32], index: 0, kind: input, shape index: {}]   ;;  %s2020_s1 = inlined_call_operand.hbm [shape: bf16[384,128], index: 1, kind: output, shape index: {}]  }
   0x1   :  { %8 = vsyncpa [#allocation3 + $0x1], 0  ;;  %s1233_s6 = smov 0   ;;  %s1235_s7 = smov 0  }
   0x2   :  { %s1237_s8 = smov 0   ;;  %s1239_s9 = smov 0  }
   0x3 LB: > { %s1254_s10 = sadd.s32 4294967295, %s1217_s9   ;;  %s917_s11 = sadd.s32 4294967294, %s1217_s9   ;;  %s1217_s9 = sphi %s1239_s9, %s2076_s9   ;;  %s1213_s8 = sphi %s1237_s8, %s2075_s8   ;;  %s1209_s7 = sphi %s1235_s7, %s2074_s7   ;;  %s1205_s6 = sphi %s1233_s6, %s2073_s6  }
   0x4   : > { %s1258_s12 = sadd.s32 1, %s1217_s9   ;;  %s47_s13 = sadd.s32 1, %s1213_s8 }
   0x5   : > { %s44_s14 = ssub.s32 %s1217_s9, %s1258_s12  ;;  %p57_p0 = scmp.ne.s32.totalorder %s1213_s8, %s1209_s7 }
   0x6   : > { %p45_p1 = scmp.eq.s32.totalorder %s44_s14, 0  ;;  %p58_p2 = scmp.eq.s32.totalorder %s1254_s10, 2 }
   0x7   : > { %p63_p3 = scmp.ne.s32.totalorder %s1209_s7, %s1205_s6  ;;  %p64_p4 = scmp.eq.s32.totalorder %s917_s11, 2 }
   0x8   : > { %s1269_s15 = scalar_select %p45_p1, %s1213_s8, %s47_s13  }
   0x9   : > { %p1271_p5 = por %p58_p2, %p57_p0  ;;  %p1275_p6 = por %p64_p4, %p63_p3 }
   0xa   : > { %p920_p7 = scmp.ge.s32.totalorder %s1217_s9, 1  ;;  %p91_p8 = scmp.lt.s32.totalorder %s1217_s9, 4 }
   0xc   : > { %p92_p9 = pnand %p920_p7, %p91_p8 }
   0xd   : > { %s922_s18 = sshll.u32 (!%p92_p9), %s1254_s10, 4  ;;  %vm151_vm0 = vcmask (!%p92_p9), 261120   ;;  %s108_s23 = sand.u32 (!%p92_p9), 1, %s1209_s7   ;;  %v1219_v36 = vmov (!%p92_p9), 0  }
   0xe   : > { %95 = sbr.rel (%p92_p9) target bundleno = 343 (0x157), region = 24  ;;  %p112_p10 = scmp.lt.s32.totalorder (!%p92_p9), %s922_s18, 47 }
   0xf   : > { %s921_s24 = sshll.u32 (!%p92_p9), %s108_s23, 6  ;;  %s977_s26 = sshll.u32 (!%p92_p9), %s1254_s10, 10 }
  0x10   : > { %s1350_s25 = scalar_lea.vmem (!%p92_p9), [#allocation2], %s921_s24  ;;  %s1970_s30 = scalar_lea.hbm (!%p92_p9), %s2020_s1, %s977_s26 }
  0x11   : > { %754 = vst [vmem:[%s1350_s25 + $0x8] sm:$0xf] (!%p92_p9), %v1219_v36  ;;  %752 = vst [vmem:[%s1350_s25] sm:$0xf] (!%p92_p9), %v1219_v36  ;;  %s855_s27 = sshll.u32 (!%p92_p9), %s1350_s25, 4  ;;  %s1978_s2 = scalar_lea.sflag (!%p92_p9), [#allocation3], %s108_s23  ;;  %s1972_s27 = int_to_ptr.vmem [resolvable:$true] %s855_s27 }
  0x12   : > { %753 = vst [vmem:[%s1350_s25 + $0x4] sm:$0xf] (!%p92_p9), %v1219_v36  ;;  %755 = vst [vmem:[%s1350_s25 + $0xc] sm:$0xf] (!%p92_p9), %v1219_v36  ;;  %s1155_s3 = scalar_lea.vmem (!%p92_p9), %s1972_s27, 1024  ;;  %s1220_s4 = smov (!%p92_p9), [#allocation2]  }
  0x13   : > { %756 = vst [vmem:[%s1350_s25 + $0x10] sm:$0xf] (!%p92_p9), %v1219_v36  ;;  %757 = vst [vmem:[%s1350_s25 + $0x14] sm:$0xf] (!%p92_p9), %v1219_v36  ;;  %p1156_p11 = scmp.ne.s32.totalorder (!%p92_p9), %s1972_s27, %s1155_s3  ;;  %s1159_s5 = sshll.u32 (!%p92_p9), %s1220_s4, 4  ;;  %s1160_s5 = int_to_ptr.vmem [resolvable:$false] %s1159_s5 }
  0x14   : > { %758 = vst [vmem:[%s1350_s25 + $0x18] sm:$0xf] (!%p92_p9), %v1219_v36  ;;  %759 = vst [vmem:[%s1350_s25 + $0x1c] sm:$0xf] (!%p92_p9), %v1219_v36  ;;  %s1161_s10 = scalar_lea.vmem (!%p92_p9), %s1160_s5, 2048  ;;  %p1162_p0 = scmp.lt.s32.totalorder (!%p92_p9), %s1972_s27, %s1160_s5 }
  0x15   : > { %s2078_s18 = smov (!%p112_p10, %s922_s18), 47  ;;  %760 = vst [vmem:[%s1350_s25 + $0x20] sm:$0xf] %v1219_v36  ;;  %761 = vst [vmem:[%s1350_s25 + $0x24] sm:$0xf] %v1219_v36  ;;  %p1157_p12 = pnand %p1156_p11, %p1271_p5 }
  0x16   : > { %s923_s19 = sshll.u32 %s2078_s18, 3  ;;  %762 = vst [vmem:[%s1350_s25 + $0x28] sm:$0xf] %v1219_v36  ;;  %763 = vst [vmem:[%s1350_s25 + $0x2c] sm:$0xf] %v1219_v36  ;;  %p1163_p1 = scmp.lt.s32.totalorder %s1161_s10, %s1155_s3 }
  0x17   : > { %s1285_s22 = scalar_lea.vmem %s2019_s0, %s923_s19  ;;  %764 = vst [vmem:[%s1350_s25 + $0x30] sm:$0xf] %v1219_v36  ;;  %765 = vst [vmem:[%s1350_s25 + $0x34] sm:$0xf] %v1219_v36  ;;  %p1158_p13 = pneg %p1157_p12 }
  0x18   : > { %v1288_v0 = vld [vmem:[%s1285_s22 + $0x10] sm:$0xff]  ;;  %v1291_v1 = vld [vmem:[%s1285_s22] sm:$0xff]  ;;  %v1294_v2 = vld [vmem:[%s1285_s22 + $0x18] sm:$0xff]  ;;  %766 = vst [vmem:[%s1350_s25 + $0x38] sm:$0xf] %v1219_v36  ;;  %p1164_p2 = por %p1163_p1, %p1162_p0 }
  0x19   : > { %v137_v3 = vmul.f32 %v1288_v0, %v1288_v0  ;;  %v135_v4 = vmul.f32 %v1291_v1, %v1291_v1  ;;  %v138_v5 = vmul.f32 %v1294_v2, %v1294_v2  ;;  %v1303_v6 = vld [vmem:[%s1285_s22 + $0x8] sm:$0xff]  ;;  %v1311_v9 = vld [vmem:[%s1285_s22 + $0x20] sm:$0xff]  ;;  %v1322_v16 = vld [vmem:[%s1285_s22 + $0x38] sm:$0xff]  ;;  %767 = vst [vmem:[%s1350_s25 + $0x3c] sm:$0xf] %v1219_v36 }
  0x1a   : > { %v136_v7 = vmul.f32 %v1303_v6, %v1303_v6  ;;  %v1308_v8 = vld [vmem:[%s1285_s22 + $0x28] sm:$0xff]  ;;  %v139_v15 = vmul.f32 %v1311_v9, %v1311_v9  ;;  %v1325_v17 = vld [vmem:[%s1285_s22 + $0x30] sm:$0xff]  ;;  %v142_v20 = vmul.f32 %v1322_v16, %v1322_v16  ;;  %v127_v23 = vld [vmem:[%s1285_s22 + $0x40] sm:$0xff]  ;;  %p1165_p3 = pnand %p1164_p2, %p1158_p13 }
  0x1b   : > { %v158_v10 = vsel %vm151_vm0, %v137_v3, 0.0  ;;  %v152_v11 = vsel %vm151_vm0, %v135_v4, 0.0  ;;  %v161_v12 = vsel %vm151_vm0, %v138_v5, 0.0  ;;  %v140_v14 = vmul.f32 %v1308_v8, %v1308_v8  ;;  %v1334_v22 = vld [vmem:[%s1285_s22 + $0x48] sm:$0xff]  ;;  %v130_v28 = vld [vmem:[%s1285_s22 + $0x58] sm:$0xff]  ;;  %v129_v29 = vld [vmem:[%s1285_s22 + $0x50] sm:$0xff] }
  0x1c   : > { %159 = vadd.xlane.f32.xlu1 %v158_v10  ;;  %153 = vadd.xlane.f32.xlu0 %v152_v11  ;;  %v155_v13 = vsel %vm151_vm0, %v136_v7, 0.0  ;;  %v164_v19 = vsel %vm151_vm0, %v139_v15, 0.0  ;;  %v141_v21 = vmul.f32 %v1325_v17, %v1325_v17  ;;  %v173_v24 = vsel %vm151_vm0, %v142_v20, 0.0  ;;  %v132_v34 = vld [vmem:[%s1285_s22 + $0x68] sm:$0xff]  ;;  %v131_v35 = vld [vmem:[%s1285_s22 + $0x60] sm:$0xff]  ;;  %v134_v41 = vld [vmem:[%s1285_s22 + $0x78] sm:$0xff] }
  0x1d   : > { %v167_v18 = vsel %vm151_vm0, %v140_v14, 0.0  ;;  %v144_v26 = vmul.f32 %v1334_v22, %v1334_v22  ;;  %v143_v27 = vmul.f32 %v127_v23, %v127_v23  ;;  %v146_v32 = vmul.f32 %v130_v28, %v130_v28  ;;  %v133_v42 = vld [vmem:[%s1285_s22 + $0x70] sm:$0xff] }
  0x1e   : > { %v170_v25 = vsel %vm151_vm0, %v141_v21, 0.0  ;;  %v145_v33 = vmul.f32 %v129_v29, %v129_v29  ;;  %v148_v39 = vmul.f32 %v132_v34, %v132_v34  ;;  %v147_v40 = vmul.f32 %v131_v35, %v131_v35 }
  0x1f   : > { %v179_v30 = vsel %vm151_vm0, %v144_v26, 0.0  ;;  %v176_v31 = vsel %vm151_vm0, %v143_v27, 0.0  ;;  %v185_v37 = vsel %vm151_vm0, %v146_v32, 0.0  ;;  %v150_v45 = vmul.f32 %v134_v41, %v134_v41 }
  0x20   : > { %162 = vadd.xlane.f32.xlu1 %v161_v12  ;;  %156 = vadd.xlane.f32.xlu0 %v155_v13  ;;  %v182_v38 = vsel %vm151_vm0, %v145_v33, 0.0  ;;  %v191_v43 = vsel %vm151_vm0, %v148_v39, 0.0  ;;  %v188_v44 = vsel %vm151_vm0, %v147_v40, 0.0  ;;  %v149_v46 = vmul.f32 %v133_v42, %v133_v42 }
  0x21   : > { %v197_v47 = vsel %vm151_vm0, %v150_v45, 0.0 }
  0x22   : > { %v194_v48 = vsel %vm151_vm0, %v149_v46, 0.0 }
  0x24   : > { %168 = vadd.xlane.f32.xlu1 %v167_v18  ;;  %165 = vadd.xlane.f32.xlu0 %v164_v19 }
  0x28   : > { %174 = vadd.xlane.f32.xlu1 %v173_v24  ;;  %171 = vadd.xlane.f32.xlu0 %v170_v25 }
  0x2c   : > { %180 = vadd.xlane.f32.xlu1 %v179_v30  ;;  %177 = vadd.xlane.f32.xlu0 %v176_v31 }
  0x30   : > { %186 = vadd.xlane.f32.xlu1 %v185_v37  ;;  %183 = vadd.xlane.f32.xlu0 %v182_v38 }
  0x34   : > { %192 = vadd.xlane.f32.xlu1 %v191_v43  ;;  %189 = vadd.xlane.f32.xlu0 %v188_v44 }
  0x38   : > { %198 = vadd.xlane.f32.xlu1 %v197_v47  ;;  %195 = vadd.xlane.f32.xlu0 %v194_v48 }
  0xa9   : > { %v160_v49 = vpop.xlane.xlu1 %159  ;;  %v154_v50 = vpop.xlane.xlu0 %153 }
  0xaa   : > { %1020 = vrsqrt.f32 %v160_v49  ;;  %vm216_vm1 = vcmp.eq.f32.partialorder %v160_v49, inf  ;;  %v219_v58 = vand.u32 2147483648, %v160_v49  ;;  %vm218_vm2 = vcmp.eq.f32.partialorder %v160_v49, 0.0 }
  0xab   : > { %1022 = vrsqrt.f32 %v154_v50  ;;  %vm202_vm3 = vcmp.eq.f32.partialorder %v154_v50, inf  ;;  %v205_v61 = vand.u32 2147483648, %v154_v50  ;;  %vm204_vm4 = vcmp.eq.f32.partialorder %v154_v50, 0.0 }
  0xad   : > { %v163_v51 = vpop.xlane.xlu1 %162  ;;  %v1376_v52 = vpop.xlane.xlu0 %156 }
  0xae   : > { %1024 = vrsqrt.f32 %v163_v51  ;;  %vm223_vm5 = vcmp.eq.f32.partialorder %v163_v51, inf  ;;  %vm225_vm6 = vcmp.eq.f32.partialorder %v163_v51, 0.0  ;;  %v226_v13 = vand.u32 2147483648, %v163_v51 }
  0xaf   : > { %1026 = vrsqrt.f32 %v1376_v52  ;;  %vm209_vm7 = vcmp.eq.f32.partialorder %v1376_v52, inf  ;;  %vm211_vm8 = vcmp.eq.f32.partialorder %v1376_v52, 0.0  ;;  %v212_v15 = vand.u32 2147483648, %v1376_v52 }
  0xb1   : > { %v1379_v53 = vpop.xlane.xlu1 %168  ;;  %v1381_v57 = vpop.xlane.xlu0 %165 }
  0xb2   : > { %1028 = vrsqrt.f32 %v1379_v53  ;;  %v240_v21 = vand.u32 2147483648, %v1379_v53  ;;  %v233_v30 = vand.u32 2147483648, %v1381_v57  ;;  %vm237_vm9 = vcmp.eq.f32.partialorder %v1379_v53, inf }
  0xb3   : > { %1030 = vrsqrt.f32 %v1381_v57  ;;  %vm239_vm12 = vcmp.eq.f32.partialorder %v1379_v53, 0.0  ;;  %vm230_vm14 = vcmp.eq.f32.partialorder %v1381_v57, inf  ;;  %vm232_vm15 = vcmp.eq.f32.partialorder %v1381_v57, 0.0 }
  0xb4   : > { %v1021_v54 = vpop.eup %1020 }
  0xb5   : > { %v1023_v55 = vpop.eup %1022  ;;  %v215_v56 = vmul.f32 %v1021_v54, %v160_v49  ;;  %v1383_v11 = vpop.xlane.xlu1 %174 }
  0xb6   : > { %v201_v59 = vmul.f32 %v1023_v55, %v154_v50  ;;  %v1389_v18 = vpop.xlane.xlu0 %171  ;;  %1032 = vrsqrt.f32 %v1383_v11  ;;  %v254_v31 = vand.u32 2147483648, %v1383_v11 }
  0xb7   : > { %v217_v60 = vsel %vm216_vm1, %v160_v49, %v215_v56  ;;  %1034 = vrsqrt.f32 %v1389_v18  ;;  %v247_v47 = vand.u32 2147483648, %v1389_v18  ;;  %vm824_vm1 = vcmask 257024  }
  0xb8   : > { %v1025_v62 = vpop.eup %1024  ;;  %v220_v63 = vsel %vm218_vm2, %v219_v58, %v217_v60  ;;  %v203_v3 = vsel %vm202_vm3, %v154_v50, %v201_v59 }
  0xb9   : > { %v1027_v4 = vpop.eup %1026  ;;  %v314_v5 = vmax.f32 %v220_v63, 1e-15  ;;  %v206_v7 = vsel %vm204_vm4, %v205_v61, %v203_v3  ;;  %v222_v10 = vmul.f32 %v1025_v62, %v163_v51  ;;  %v1404_v32 = vpop.xlane.xlu1 %180 }
  0xba   : > { %v312_v12 = vmax.f32 %v206_v7, 1e-15  ;;  %v208_v20 = vmul.f32 %v1027_v4, %v1376_v52 }
  0xbb   : > { %v926_v14 = vclamps-f32 %v314_v5, 0.9999999  ;;  %v224_v25 = vsel %vm223_vm5, %v163_v51, %v222_v10  ;;  %vm251_vm5 = vcmp.eq.f32.partialorder %v1383_v11, inf }
  0xbc   : > { %v924_v19 = vclamps-f32 %v312_v12, 0.9999999  ;;  %v227_v34 = vsel %vm225_vm6, %v226_v13, %v224_v25  ;;  %v210_v35 = vsel %vm209_vm7, %v1376_v52, %v208_v20  ;;  %v1029_v48 = vpop.eup %1028  ;;  %vm253_vm7 = vcmp.eq.f32.partialorder %v1383_v11, 0.0 }
  0xbd   : > { %v378_v23 = vadd.f32 1.0, %v926_v14  ;;  %v1394_v24 = vsub.f32 0.0, %v926_v14  ;;  %v381_v26 = vmul.f32 -0.5, %v926_v14  ;;  %v384_v36 = vand.u32 2147483647, %v926_v14  ;;  %v1031_v54 = vpop.eup %1030 }
  0xbe   : > { %v360_v27 = vadd.f32 1.0, %v924_v19  ;;  %v1398_v28 = vsub.f32 0.0, %v924_v19  ;;  %v363_v33 = vmul.f32 -0.5, %v924_v19  ;;  %v366_v41 = vand.u32 2147483647, %v924_v19 }
  0xbf   : > { %1036 = vlog2.f32 %v378_v23  ;;  %v538_v29 = vadd.f32 1.0, %v1394_v24  ;;  %v541_v37 = vmul.f32 -0.5, %v1394_v24  ;;  %v382_v39 = vadd.f32 1.0, %v381_v26 }
  0xc0   : > { %1038 = vlog2.f32 %v360_v27  ;;  %v520_v38 = vadd.f32 1.0, %v1398_v28  ;;  %v544_v40 = vand.u32 2147483647, %v1394_v24  ;;  %v523_v42 = vmul.f32 -0.5, %v1398_v28  ;;  %v1433_v59 = vpop.eup %1032 }
  0xc1   : > { %1040 = vlog2.f32 %v538_v29  ;;  %v315_v43 = vmax.f32 %v227_v34, 1e-15  ;;  %v213_v44 = vsel %vm211_vm8, %v212_v15, %v210_v35  ;;  %v364_v45 = vadd.f32 1.0, %v363_v33  ;;  %v1444_v3 = vpop.eup %1034 }
  0xc2   : > { %1042 = vrsqrt.f32 %v1404_v32  ;;  %v313_v46 = vmax.f32 %v213_v44, 1e-15  ;;  %vm1419_vm10 = vcmp.lt.f32.partialorder %v384_v36, 0.0004427343  ;;  %v542_v50 = vadd.f32 1.0, %v541_v37 }
  0xc3   : > { %1044 = vlog2.f32 %v520_v38  ;;  %v1423_v51 = vclamps-f32 %v315_v43, 0.9999999  ;;  %v383_v55 = vmul.f32 %v926_v14, %v382_v39  ;;  %vm1425_vm11 = vcmp.lt.f32.partialorder %v544_v40, 0.0004427343 }
  0xc4   : > { %1046 = vrcp.f32 %v314_v5  ;;  %v526_v56 = vand.u32 2147483647, %v1398_v28  ;;  %v1430_v58 = vclamps-f32 %v313_v46, 0.9999999  ;;  %vm1435_vm13 = vcmp.lt.f32.partialorder %v366_v41, 0.0004427343 }
  0xc5   : > { %1048 = vrcp.f32 %v312_v12  ;;  %v524_v61 = vadd.f32 1.0, %v523_v42  ;;  %v387_v62 = vadd.f32 1.0, %v1423_v51  ;;  %v1441_v63 = vsub.f32 0.0, %v1423_v51 }
  0xc6   : > { %1050 = vrcp.f32 %v315_v43  ;;  %v365_v4 = vmul.f32 %v924_v19, %v364_v45  ;;  %v369_v5 = vadd.f32 1.0, %v1430_v58  ;;  %v236_v7 = vmul.f32 %v1029_v48, %v1379_v53 }
  0xc7   : > { %1052 = vrcp.f32 %v313_v46  ;;  %v390_v12 = vmul.f32 -0.5, %v1423_v51  ;;  %v547_v13 = vadd.f32 1.0, %v1441_v63  ;;  %v1451_v14 = vsub.f32 0.0, %v1430_v58 }
  0xc8   : > { %1054 = vlog2.f32 %v387_v62  ;;  %v543_v19 = vmul.f32 %v542_v50, %v1394_v24  ;;  %vm1455_vm0 = vcmp.lt.f32.partialorder %v526_v56, 0.0004427343  ;;  %v525_v26 = vmul.f32 %v524_v61, %v1398_v28 }
  0xc9   : > { %v1037_v10 = vpop.eup %1036  ;;  %1056 = vlog2.f32 %v369_v5  ;;  %v372_v27 = vmul.f32 -0.5, %v1430_v58  ;;  %v229_v29 = vmul.f32 %v1031_v54, %v1381_v57  ;;  %v393_v36 = vand.u32 2147483647, %v1423_v51 }
  0xca   : > { %v1039_v15 = vpop.eup %1038  ;;  %v380_v20 = vmul.f32 0.6931472, %v1037_v10  ;;  %1058 = vlog2.f32 %v547_v13  ;;  %v238_v24 = vsel %vm237_vm9, %v1379_v53, %v236_v7  ;;  %v391_v38 = vadd.f32 1.0, %v390_v12 }
  0xcb   : > { %v1041_v25 = vpop.eup %1040  ;;  %v362_v35 = vmul.f32 0.6931472, %v1039_v15  ;;  %v550_v39 = vmul.f32 -0.5, %v1441_v63  ;;  %v375_v28 = vand.u32 2147483647, %v1430_v58  ;;  %v529_v40 = vadd.f32 1.0, %v1451_v14 }
  0xcc   : > { %v1462_v33 = vpop.eup %1042  ;;  %v540_v34 = vmul.f32 0.6931472, %v1041_v25  ;;  %v386_v42 = vsel %vm1419_vm10, %v383_v55, %v380_v20  ;;  %v553_v45 = vand.u32 2147483647, %v1441_v63  ;;  %v373_v50 = vadd.f32 1.0, %v372_v27 }
  0xcd   : > { %v1045_v37 = vpop.eup %1044  ;;  %1060 = vlog2.f32 %v529_v40  ;;  %v1480_v54 = vsel %vm239_vm12, %v240_v21, %v238_v24  ;;  %v368_v49 = vsel %vm1435_vm13, %v365_v4, %v362_v35  ;;  %v231_v56 = vsel %vm230_vm14, %v1381_v57, %v229_v29 }
  0xce   : > { %v1047_v41 = vpop.eup %1046  ;;  %v546_v43 = vsel %vm1425_vm11, %v543_v19, %v540_v34  ;;  %v522_v44 = vmul.f32 0.6931472, %v1045_v37  ;;  %v317_v52 = vmax.f32 %v1480_v54, 1e-15  ;;  %v392_v7 = vmul.f32 %v1423_v51, %v391_v38 }
  0xcf   : > { %v1049_v46 = vpop.eup %1048  ;;  %v666_v48 = vsub.f32 %v386_v42, %v546_v43  ;;  %vm1491_vm2 = vcmp.lt.f32.partialorder %v393_v36, 0.0004427343  ;;  %v551_v60 = vadd.f32 1.0, %v550_v39  ;;  %v532_v4 = vmul.f32 -0.5, %v1451_v14 }
  0xd0   : > { %v528_v55 = vsel %vm1455_vm0, %v525_v26, %v522_v44  ;;  %v1051_v61 = vpop.eup %1050  ;;  %v1500_v10 = vclamps-f32 %v317_v52, 0.9999999  ;;  %v1506_v12 = vsel %vm232_vm15, %v233_v30, %v231_v56  ;;  %vm1508_vm3 = vcmp.lt.f32.partialorder %v553_v45, 0.0004427343 }
  0xd1   : > { %v682_v62 = vmul.f32 0.5, %v666_v48  ;;  %v664_v5 = vsub.f32 %v368_v49, %v528_v55  ;;  %v1495_v21 = vpop.eup %1052  ;;  %v535_v19 = vand.u32 2147483647, %v1451_v14  ;;  %v374_v26 = vmul.f32 %v1430_v58, %v373_v50 }
  0xd2   : > { %v1055_v51 = vpop.eup %1054  ;;  %vm1514_vm4 = vcmp.lt.f32.partialorder %v375_v28, 0.0004427343  ;;  %v405_v57 = vadd.f32 1.0, %v1500_v10  ;;  %v509_v35 = vsub.f32 0.0, %v1500_v10  ;;  %v316_v36 = vmax.f32 %v1506_v12, 1e-15 }
  0xd3   : > { %v714_v13 = vmul.f32 %v1047_v41, %v682_v62  ;;  %v680_v15 = vmul.f32 0.5, %v664_v5  ;;  %v1057_v23 = vpop.eup %1056  ;;  %v389_v25 = vmul.f32 0.6931472, %v1055_v51  ;;  %v552_v58 = vmul.f32 %v551_v60, %v1441_v63 }
  0xd4   : > { %v1059_v30 = vpop.eup %1058  ;;  %v533_v37 = vadd.f32 1.0, %v532_v4  ;;  %1062 = vlog2.f32 %v405_v57  ;;  %vm1525_vm6 = vcmp.lt.f32.partialorder %v535_v19, 0.0004427343  ;;  %v371_v41 = vmul.f32 0.6931472, %v1057_v23 }
  0xd5   : > { %v730_v29 = vmul.f32 %v714_v13, %v1288_v0  ;;  %v712_v34 = vmul.f32 %v1049_v46, %v680_v15  ;;  %v549_v24 = vmul.f32 0.6931472, %v1059_v30  ;;  %v408_v0 = vmul.f32 -0.5, %v1500_v10 }
  0xd6   : > { %v395_v40 = vsel %vm1491_vm2, %v392_v7, %v389_v25  ;;  %v565_v42 = vadd.f32 1.0, %v509_v35  ;;  %v1539_v45 = vclamps-f32 %v316_v36, 0.9999999  ;;  %v250_v46 = vmul.f32 %v1433_v59, %v1383_v11 }
  0xd7   : > { %v963_v38 = vpack.c.bf16 %v730_v29, %v730_v29  ;;  %v728_v39 = vmul.f32 %v712_v34, %v1291_v1  ;;  %v555_v63 = vsel %vm1508_vm3, %v552_v58, %v549_v24  ;;  %v1061_v43 = vpop.eup %1060  ;;  %vm244_vm8 = vcmp.eq.f32.partialorder %v1389_v18, inf }
  0xd8   : > { %v667_v44 = vsub.f32 %v395_v40, %v555_v63  ;;  %v531_v48 = vmul.f32 0.6931472, %v1061_v43  ;;  %v534_v50 = vmul.f32 %v533_v37, %v1451_v14  ;;  %1064 = vlog2.f32 %v565_v42  ;;  %v1598_v37 = vpop.xlane.xlu0 %177 }
  0xd9   : > { %827 = vst.msk [vmem:[%s1350_s25 + $0x8] sm:$0xf] %vm824_vm1, %v963_v38  ;;  %v961_v1 = vpack.c.bf16 %v728_v39, %v728_v39  ;;  %v568_v49 = vmul.f32 -0.5, %v509_v35  ;;  %v409_v56 = vadd.f32 1.0, %v408_v0  ;;  %v411_v62 = vand.u32 2147483647, %v1500_v10 }
  0xda   : > { %v683_v55 = vmul.f32 0.5, %v667_v44  ;;  %v396_v5 = vadd.f32 1.0, %v1539_v45  ;;  %vm246_vm9 = vcmp.eq.f32.partialorder %v1389_v18, 0.0  ;;  %vm265_vm10 = vcmp.eq.f32.partialorder %v1404_v32, inf }
  0xdb   : > { %825 = vst.msk [vmem:[%s1350_s25] sm:$0xf] %vm824_vm1, %v961_v1  ;;  %v377_v59 = vsel %vm1514_vm4, %v374_v26, %v371_v41  ;;  %v537_v14 = vsel %vm1525_vm6, %v534_v50, %v531_v48  ;;  %v571_v7 = vand.u32 2147483647, %v509_v35  ;;  %v1556_v53 = vsub.f32 0.0, %v1539_v45 }
  0xdc   : > { %v715_v60 = vmul.f32 %v1051_v61, %v683_v55  ;;  %v665_v4 = vsub.f32 %v377_v59, %v537_v14  ;;  %1066 = vlog2.f32 %v396_v5  ;;  %v252_v51 = vsel %vm251_vm5, %v1383_v11, %v250_v46 }
  0xdd   : > { %vm267_vm11 = vcmp.eq.f32.partialorder %v1404_v32, 0.0  ;;  %v569_v13 = vadd.f32 1.0, %v568_v49  ;;  %1068 = vrcp.f32 %v317_v52  ;;  %v556_v15 = vadd.f32 1.0, %v1556_v53 }
  0xde   : > { %v243_v20 = vmul.f32 %v1444_v3, %v1389_v18  ;;  %v731_v19 = vmul.f32 %v715_v60, %v1294_v2  ;;  %v681_v61 = vmul.f32 0.5, %v665_v4  ;;  %vm1568_vm12 = vcmp.lt.f32.partialorder %v411_v62, 0.0004427343  ;;  %v1063_v26 = vpop.eup %1062 }
  0xdf   : > { %v399_v25 = vmul.f32 -0.5, %v1539_v45  ;;  %v410_v27 = vmul.f32 %v1500_v10, %v409_v56  ;;  %vm1574_vm13 = vcmp.lt.f32.partialorder %v571_v7, 0.0004427343  ;;  %1070 = vlog2.f32 %v556_v15 }
  0xe0   : > { %v1582_v2 = vsel %vm253_vm7, %v254_v31, %v252_v51  ;;  %v964_v3 = vpack.c.bf16 %v731_v19, %v731_v19  ;;  %v713_v52 = vmul.f32 %v1495_v21, %v681_v61  ;;  %v559_v57 = vmul.f32 -0.5, %v1556_v53 }
  0xe1   : > { %v319_v30 = vmax.f32 %v1582_v2, 1e-15  ;;  %v570_v29 = vmul.f32 %v569_v13, %v509_v35  ;;  %v402_v10 = vand.u32 2147483647, %v1539_v45  ;;  %v245_v34 = vsel %vm244_vm8, %v1389_v18, %v243_v20 }
  0xe2   : > { %v264_v24 = vmul.f32 %v1462_v33, %v1404_v32  ;;  %828 = vst.msk [vmem:[%s1350_s25 + $0xc] sm:$0xf] %vm824_vm1, %v964_v3  ;;  %v729_v11 = vmul.f32 %v713_v52, %v1303_v6  ;;  %v407_v31 = vmul.f32 0.6931472, %v1063_v26  ;;  %v400_v21 = vadd.f32 1.0, %v399_v25  ;;  %v1065_v35 = vpop.eup %1064 }
  0xe3   : > { %v1596_v58 = vclamps-f32 %v319_v30, 0.9999999  ;;  %1072 = vrcp.f32 %v316_v36  ;;  %v1606_v33 = vsel %vm246_vm9, %v247_v47, %v245_v34  ;;  %v268_v38 = vand.u32 2147483648, %v1404_v32 }
  0xe4   : > { %v266_v6 = vsel %vm265_vm10, %v1404_v32, %v264_v24  ;;  %v962_v39 = vpack.c.bf16 %v729_v11, %v729_v11  ;;  %v567_v28 = vmul.f32 0.6931472, %v1065_v35  ;;  %v560_v0 = vadd.f32 1.0, %v559_v57 }
  0xe5   : > { %v423_v40 = vadd.f32 1.0, %v1596_v58  ;;  %v511_v12 = vsub.f32 0.0, %v1596_v58  ;;  %v318_v36 = vmax.f32 %v1606_v33, 1e-15  ;;  %v1617_v18 = vsel %vm267_vm11, %v268_v38, %v266_v6 }
  0xe6   : > { %1074 = vrsqrt.f32 %v1598_v37  ;;  %v1067_v47 = vpop.eup %1066  ;;  %826 = vst.msk [vmem:[%s1350_s25 + $0x4] sm:$0xf] %vm824_vm1, %v962_v39  ;;  %v413_v63 = vsel %vm1568_vm12, %v410_v27, %v407_v31  ;;  %v573_v41 = vsel %vm1574_vm13, %v570_v29, %v567_v28  ;;  %v321_v42 = vmax.f32 %v1617_v18, 1e-15 }
  0xe7   : > { %1076 = vlog2.f32 %v423_v40  ;;  %v1069_v43 = vpop.eup %1068  ;;  %v669_v1 = vsub.f32 %v413_v63, %v573_v41  ;;  %v562_v32 = vand.u32 2147483647, %v1556_v53  ;;  %v583_v44 = vadd.f32 1.0, %v511_v12 }
  0xe8   : > { %v398_v46 = vmul.f32 0.6931472, %v1067_v47  ;;  %vm1628_vm14 = vcmp.lt.f32.partialorder %v402_v10, 0.0004427343  ;;  %v1634_v50 = vclamps-f32 %v318_v36, 0.9999999  ;;  %v401_v56 = vmul.f32 %v1539_v45, %v400_v21 }
  0xe9   : > { %v1071_v49 = vpop.eup %1070  ;;  %v685_v55 = vmul.f32 0.5, %v669_v1  ;;  %1078 = vlog2.f32 %v583_v44  ;;  %v1639_v62 = vclamps-f32 %v321_v42, 0.9999999  ;;  %v561_v59 = vmul.f32 %v560_v0, %v1556_v53 }
  0xea   : > { %v558_v5 = vmul.f32 0.6931472, %v1071_v49  ;;  %v426_v14 = vmul.f32 -0.5, %v1596_v58  ;;  %v414_v7 = vadd.f32 1.0, %v1634_v50  ;;  %vm563_vm15 = vcmp.lt.f32.partialorder %v562_v32, 0.0004427343 }
  0xeb   : > { %v717_v60 = vmul.f32 %v1069_v43, %v685_v55  ;;  %v586_v4 = vmul.f32 -0.5, %v511_v12  ;;  %v1645_v51 = vsub.f32 0.0, %v1634_v50  ;;  %v404_v45 = vsel %vm1628_vm14, %v401_v56, %v398_v46 }
  0xec   : > { %v564_v13 = vsel %vm563_vm15, %v561_v59, %v558_v5  ;;  %1080 = vlog2.f32 %v414_v7  ;;  %v441_v15 = vadd.f32 1.0, %v1639_v62  ;;  %v429_v61 = vand.u32 2147483647, %v1596_v58 }
  0xed   : > { %v1073_v20 = vpop.eup %1072  ;;  %v733_v53 = vmul.f32 %v717_v60, %v1308_v8  ;;  %v668_v19 = vsub.f32 %v404_v45, %v564_v13  ;;  %v427_v23 = vadd.f32 1.0, %v426_v14  ;;  %v589_v25 = vand.u32 2147483647, %v511_v12 }
  0xee   : > { %1082 = vrcp.f32 %v319_v30  ;;  %v574_v26 = vadd.f32 1.0, %v1645_v51  ;;  %v587_v3 = vadd.f32 1.0, %v586_v4  ;;  %v417_v57 = vmul.f32 -0.5, %v1634_v50 }
  0xef   : > { %v966_v54 = vpack.c.bf16 %v733_v53, %v733_v53  ;;  %v684_v2 = vmul.f32 0.5, %v668_v19  ;;  %1084 = vlog2.f32 %v441_v15  ;;  %vm258_vm0 = vcmp.eq.f32.partialorder %v1598_v37, inf }
  0xf0   : > { %v1075_v27 = vpop.eup %1074  ;;  %1086 = vlog2.f32 %v574_v26  ;;  %vm1657_vm2 = vcmp.lt.f32.partialorder %v429_v61, 0.0004427343  ;;  %v577_v30 = vmul.f32 -0.5, %v1645_v51  ;;  %v1663_v10 = vsub.f32 0.0, %v1639_v62 }
  0xf1   : > { %v1077_v52 = vpop.eup %1076  ;;  %830 = vst.msk [vmem:[%s1350_s25 + $0x14] sm:$0xf] %vm824_vm1, %v966_v54  ;;  %v716_v8 = vmul.f32 %v1073_v20, %v684_v2  ;;  %v428_v24 = vmul.f32 %v1596_v58, %v427_v23  ;;  %vm1666_vm3 = vcmp.lt.f32.partialorder %v589_v25, 0.0004427343  ;;  %v257_v31 = vmul.f32 %v1075_v27, %v1598_v37  ;;  %v1677_v58 = vpop.xlane.xlu1 %186 }
  0xf2   : > { %v425_v34 = vmul.f32 0.6931472, %v1077_v52  ;;  %v588_v6 = vmul.f32 %v587_v3, %v511_v12  ;;  %v420_v38 = vand.u32 2147483647, %v1634_v50  ;;  %v601_v39 = vadd.f32 1.0, %v1663_v10 }
  0xf3   : > { %v1079_v21 = vpop.eup %1078  ;;  %v732_v35 = vmul.f32 %v716_v8, %v1311_v9  ;;  %v418_v0 = vadd.f32 1.0, %v417_v57  ;;  %v580_v40 = vand.u32 2147483647, %v1645_v51  ;;  %1088 = vrcp.f32 %v318_v36  ;;  %v1688_v36 = vpop.xlane.xlu0 %183 }
  0xf4   : > { %v585_v28 = vmul.f32 0.6931472, %v1079_v21  ;;  %v578_v63 = vadd.f32 1.0, %v577_v30  ;;  %1090 = vlog2.f32 %v601_v39  ;;  %v259_v9 = vsel %vm258_vm0, %v1598_v37, %v257_v31 }
  0xf5   : > { %v965_v47 = vpack.c.bf16 %v732_v35, %v732_v35  ;;  %v431_v41 = vsel %vm1657_vm2, %v428_v24, %v425_v34  ;;  %v444_v1 = vmul.f32 -0.5, %v1639_v62  ;;  %v261_v33 = vand.u32 2147483648, %v1598_v37  ;;  %v1710_v13 = vpop.xlane.xlu1 %192 }
  0xf6   : > { %v1081_v12 = vpop.eup %1080  ;;  %v591_v43 = vsel %vm1666_vm3, %v588_v6, %v585_v28  ;;  %vm260_vm4 = vcmp.eq.f32.partialorder %v1598_v37, 0.0  ;;  %1092 = vrsqrt.f32 %v1677_v58  ;;  %vm1694_vm5 = vcmp.lt.f32.partialorder %v420_v38, 0.0004427343 }
  0xf7   : > { %829 = vst.msk [vmem:[%s1350_s25 + $0x10] sm:$0xf] %vm824_vm1, %v965_v47  ;;  %v671_v32 = vsub.f32 %v431_v41, %v591_v43  ;;  %v416_v46 = vmul.f32 0.6931472, %v1081_v12  ;;  %v604_v49 = vmul.f32 -0.5, %v1663_v10  ;;  %v1699_v55 = vsel %vm260_vm4, %v261_v33, %v259_v9  ;;  %v1747_v11 = vpop.xlane.xlu0 %189 }
  0xf8   : > { %v1083_v44 = vpop.eup %1082  ;;  %v419_v59 = vmul.f32 %v1634_v50, %v418_v0  ;;  %v320_v14 = vmax.f32 %v1699_v55, 1e-15  ;;  %1094 = vrsqrt.f32 %v1688_v36  ;;  %v579_v7 = vmul.f32 %v578_v63, %v1645_v51 }
  0xf9   : > { %v1085_v56 = vpop.eup %1084  ;;  %v687_v5 = vmul.f32 0.5, %v671_v32  ;;  %vm1705_vm6 = vcmp.lt.f32.partialorder %v580_v40, 0.0004427343  ;;  %v445_v4 = vadd.f32 1.0, %v444_v1  ;;  %v447_v45 = vand.u32 2147483647, %v1639_v62  ;;  %v1768_v48 = vpop.xlane.xlu1 %198 }
  0xfa   : > { %v1087_v37 = vpop.eup %1086  ;;  %v607_v50 = vand.u32 2147483647, %v1663_v10  ;;  %v1715_v53 = vclamps-f32 %v320_v14, 0.9999999  ;;  %v422_v51 = vsel %vm1694_vm5, %v419_v59, %v416_v46  ;;  %v443_v19 = vmul.f32 0.6931472, %v1085_v56 }
  0xfb   : > { %v719_v15 = vmul.f32 %v1083_v44, %v687_v5  ;;  %v576_v20 = vmul.f32 0.6931472, %v1087_v37  ;;  %v605_v61 = vadd.f32 1.0, %v604_v49  ;;  %1096 = vrcp.f32 %v321_v42 }
  0xfc   : > { %v432_v26 = vadd.f32 1.0, %v1715_v53  ;;  %1098 = vrsqrt.f32 %v1710_v13  ;;  %vm1726_vm7 = vcmp.lt.f32.partialorder %v447_v45, 0.0004427343  ;;  %v1731_v3 = vsub.f32 0.0, %v1715_v53 }
  0xfd   : > { %v735_v23 = vmul.f32 %v719_v15, %v1322_v16  ;;  %v582_v25 = vsel %vm1705_vm6, %v579_v7, %v576_v20  ;;  %v1089_v27 = vpop.eup %1088  ;;  %v446_v16 = vmul.f32 %v1639_v62, %v445_v4  ;;  %vm1734_vm8 = vcmp.lt.f32.partialorder %v607_v50, 0.0004427343 }
  0xfe   : > { %v670_v54 = vsub.f32 %v422_v51, %v582_v25  ;;  %v1091_v18 = vpop.eup %1090  ;;  %1100 = vlog2.f32 %v432_v26  ;;  %v606_v29 = vmul.f32 %v605_v61, %v1663_v10  ;;  %v592_v30 = vadd.f32 1.0, %v1731_v3 }
  0xff   : > { %v968_v42 = vpack.c.bf16 %v735_v23, %v735_v23  ;;  %v603_v8 = vmul.f32 0.6931472, %v1091_v18  ;;  %v449_v24 = vsel %vm1726_vm7, %v446_v16, %v443_v19  ;;  %vm279_vm9 = vcmp.eq.f32.partialorder %v1677_v58, inf }
 0x100   : > { %v686_v57 = vmul.f32 0.5, %v670_v54  ;;  %v1093_v34 = vpop.eup %1092  ;;  %vm281_vm10 = vcmp.eq.f32.partialorder %v1677_v58, 0.0  ;;  %v282_v62 = vand.u32 2147483648, %v1677_v58  ;;  %1102 = vlog2.f32 %v592_v30 }
 0x101   : > { %832 = vst.msk [vmem:[%s1350_s25 + $0x1c] sm:$0xf] %vm824_vm1, %v968_v42  ;;  %v609_v10 = vsel %vm1734_vm8, %v606_v29, %v603_v8  ;;  %v278_v21 = vmul.f32 %v1093_v34, %v1677_v58  ;;  %v435_v38 = vmul.f32 -0.5, %v1715_v53  ;;  %vm272_vm11 = vcmp.eq.f32.partialorder %v1688_v36, inf }
 0x102   : > { %v718_v31 = vmul.f32 %v1089_v27, %v686_v57  ;;  %v1095_v35 = vpop.eup %1094  ;;  %v673_v6 = vsub.f32 %v449_v24, %v609_v10  ;;  %vm274_vm12 = vcmp.eq.f32.partialorder %v1688_v36, 0.0  ;;  %1104 = vrsqrt.f32 %v1747_v11 }
 0x103   : > { %v280_v28 = vsel %vm279_vm9, %v1677_v58, %v278_v21  ;;  %v271_v0 = vmul.f32 %v1095_v35, %v1688_v36  ;;  %v595_v47 = vmul.f32 -0.5, %v1731_v3  ;;  %v275_v9 = vand.u32 2147483648, %v1688_v36 }
 0x104   : > { %v734_v39 = vmul.f32 %v718_v31, %v1325_v17  ;;  %v689_v40 = vmul.f32 0.5, %v673_v6  ;;  %v283_v63 = vsel %vm281_vm10, %v282_v62, %v280_v28  ;;  %vm293_vm13 = vcmp.eq.f32.partialorder %v1710_v13, inf }
 0x105   : > { %v1097_v12 = vpop.eup %1096  ;;  %v323_v43 = vmax.f32 %v283_v63, 1e-15  ;;  %v273_v17 = vsel %vm272_vm11, %v1688_v36, %v271_v0  ;;  %v436_v32 = vadd.f32 1.0, %v435_v38  ;;  %v438_v44 = vand.u32 2147483647, %v1715_v53  ;;  %v1148_v63 = vld [vmem:[%s1285_s22 + $0x40] sm:$0xff] }
 0x106   : > { %v967_v41 = vpack.c.bf16 %v734_v39, %v734_v39  ;;  %v1099_v1 = vpop.eup %1098  ;;  %v721_v33 = vmul.f32 %v1097_v12, %v689_v40  ;;  %v276_v46 = vsel %vm274_vm12, %v275_v9, %v273_v17  ;;  %v598_v58 = vand.u32 2147483647, %v1731_v3 }
 0x107   : > { %1106 = vrcp.f32 %v320_v14  ;;  %v1775_v49 = vclamps-f32 %v323_v43, 0.9999999  ;;  %v322_v56 = vmax.f32 %v276_v46, 1e-15  ;;  %v596_v37 = vadd.f32 1.0, %v595_v47 }
 0x108   : > { %831 = vst.msk [vmem:[%s1350_s25 + $0x18] sm:$0xf] %vm824_vm1, %v967_v41  ;;  %v1101_v5 = vpop.eup %1100  ;;  %v737_v59 = vmul.f32 %v721_v33, %v1334_v22  ;;  %vm295_vm14 = vcmp.eq.f32.partialorder %v1710_v13, 0.0  ;;  %v296_v36 = vand.u32 2147483648, %v1710_v13  ;;  %v292_v60 = vmul.f32 %v1099_v1, %v1710_v13 }
 0x109   : > { %v459_v7 = vadd.f32 1.0, %v1775_v49  ;;  %vm286_vm15 = vcmp.eq.f32.partialorder %v1747_v11, inf  ;;  %1108 = vrsqrt.f32 %v1768_v48  ;;  %v434_v14 = vmul.f32 0.6931472, %v1101_v5 }
 0x10a   : > { %v970_v55 = vpack.c.bf16 %v737_v59, %v737_v59  ;;  %v1785_v4 = vsub.f32 0.0, %v1775_v49  ;;  %v1787_v22 = vclamps-f32 %v322_v56, 0.9999999  ;;  %v1103_v45 = vpop.eup %1102  ;;  %v437_v15 = vmul.f32 %v1715_v53, %v436_v32 }
 0x10b   : > { %vm1790_vm0 = vcmp.lt.f32.partialorder %v438_v44, 0.0004427343  ;;  %vm1794_vm2 = vcmp.lt.f32.partialorder %v598_v58, 0.0004427343  ;;  %1110 = vlog2.f32 %v459_v7  ;;  %v594_v51 = vmul.f32 0.6931472, %v1103_v45 }
 0x10c   : > { %834 = vst.msk [vmem:[%s1350_s25 + $0x24] sm:$0xf] %vm824_vm1, %v970_v55  ;;  %v597_v19 = vmul.f32 %v596_v37, %v1731_v3  ;;  %v619_v61 = vadd.f32 1.0, %v1785_v4  ;;  %vm288_vm3 = vcmp.eq.f32.partialorder %v1747_v11, 0.0  ;;  %v1105_v23 = vpop.eup %1104  ;;  %v462_v53 = vmul.f32 -0.5, %v1775_v49  ;;  %v1813_v3 = vpop.xlane.xlu0 %195 }
 0x10d   : > { %1112 = vrcp.f32 %v323_v43  ;;  %v450_v25 = vadd.f32 1.0, %v1787_v22  ;;  %v294_v26 = vsel %vm293_vm13, %v1710_v13, %v292_v60  ;;  %v440_v27 = vsel %vm1790_vm0, %v437_v15, %v434_v14 }
 0x10e   : > { %v600_v54 = vsel %vm1794_vm2, %v597_v19, %v594_v51  ;;  %v465_v2 = vand.u32 2147483647, %v1775_v49  ;;  %1114 = vlog2.f32 %v619_v61  ;;  %v289_v42 = vand.u32 2147483648, %v1747_v11 }
 0x10f   : > { %v672_v18 = vsub.f32 %v440_v27, %v600_v54  ;;  %1116 = vlog2.f32 %v450_v25  ;;  %v310_v16 = vand.u32 2147483648, %v1768_v48  ;;  %v622_v52 = vmul.f32 -0.5, %v1785_v4 }
 0x110   : > { %v1819_v57 = vsub.f32 0.0, %v1787_v22  ;;  %v1823_v8 = vsel %vm295_vm14, %v296_v36, %v294_v26  ;;  %v285_v29 = vmul.f32 %v1105_v23, %v1747_v11  ;;  %v463_v24 = vadd.f32 1.0, %v462_v53 }
 0x111   : > { %v1107_v30 = vpop.eup %1106  ;;  %v688_v34 = vmul.f32 0.5, %v672_v18  ;;  %v325_v62 = vmax.f32 %v1823_v8, 1e-15  ;;  %1118 = vrsqrt.f32 %v1813_v3  ;;  %vm1828_vm4 = vcmp.lt.f32.partialorder %v465_v2, 0.0004427343 }
 0x112   : > { %v610_v10 = vadd.f32 1.0, %v1819_v57  ;;  %1120 = vrcp.f32 %v322_v56  ;;  %v287_v13 = vsel %vm286_vm15, %v1747_v11, %v285_v29  ;;  %v453_v6 = vmul.f32 -0.5, %v1787_v22 }
 0x113   : > { %v1109_v21 = vpop.eup %1108  ;;  %v720_v35 = vmul.f32 %v1107_v30, %v688_v34  ;;  %v937_v38 = vclamps-f32 %v325_v62, 0.9999999  ;;  %v1839_v39 = vsel %vm288_vm3, %v289_v42, %v287_v13  ;;  %v623_v28 = vadd.f32 1.0, %v622_v52 }
 0x114   : > { %v625_v0 = vand.u32 2147483647, %v1785_v4  ;;  %1122 = vlog2.f32 %v610_v10  ;;  %v324_v40 = vmax.f32 %v1839_v39, 1e-15  ;;  %vm307_vm5 = vcmp.eq.f32.partialorder %v1768_v48, inf }
 0x115   : > { %v1111_v47 = vpop.eup %1110  ;;  %v736_v9 = vmul.f32 %v1148_v63, %v720_v35  ;;  %v464_v12 = vmul.f32 %v1775_v49, %v463_v24  ;;  %v613_v41 = vmul.f32 -0.5, %v1819_v57  ;;  %v477_v43 = vadd.f32 1.0, %v937_v38 }
 0x116   : > { %v456_v11 = vand.u32 2147483647, %v1787_v22  ;;  %v480_v17 = vmul.f32 -0.5, %v937_v38  ;;  %v1848_v1 = vsub.f32 0.0, %v937_v38  ;;  %v1852_v33 = vclamps-f32 %v324_v40, 0.9999999 }
 0x117   : > { %vm309_vm6 = vcmp.eq.f32.partialorder %v1768_v48, 0.0  ;;  %v1113_v32 = vpop.eup %1112  ;;  %v969_v44 = vpack.c.bf16 %v736_v9, %v736_v9  ;;  %v461_v46 = vmul.f32 0.6931472, %v1111_v47  ;;  %v454_v58 = vadd.f32 1.0, %v453_v6  ;;  %v1149_v6 = vld [vmem:[%s1285_s22 + $0x58] sm:$0xff] }
 0x118   : > { %1124 = vlog2.f32 %v477_v43  ;;  %v1115_v49 = vpop.eup %1114  ;;  %v624_v56 = vmul.f32 %v623_v28, %v1785_v4  ;;  %vm1856_vm7 = vcmp.lt.f32.partialorder %v625_v0, 0.0004427343  ;;  %v637_v59 = vadd.f32 1.0, %v1848_v1 }
 0x119   : > { %v306_v37 = vmul.f32 %v1109_v21, %v1768_v48  ;;  %vm300_vm8 = vcmp.eq.f32.partialorder %v1813_v3, inf  ;;  %v1117_v36 = vpop.eup %1116  ;;  %833 = vst.msk [vmem:[%s1350_s25 + $0x20] sm:$0xf] %vm824_vm1, %v969_v44  ;;  %v621_v7 = vmul.f32 0.6931472, %v1115_v49  ;;  %v614_v60 = vadd.f32 1.0, %v613_v41 }
 0x11a   : > { %v616_v55 = vand.u32 2147483647, %v1819_v57  ;;  %v468_v14 = vadd.f32 1.0, %v1852_v33  ;;  %vm1867_vm9 = vcmp.lt.f32.partialorder %v456_v11, 0.0004427343  ;;  %v481_v45 = vadd.f32 1.0, %v480_v17 }
 0x11b   : > { %v483_v15 = vand.u32 2147483647, %v937_v38  ;;  %1126 = vlog2.f32 %v637_v59  ;;  %v1119_v20 = vpop.eup %1118  ;;  %v467_v50 = vsel %vm1828_vm4, %v464_v12, %v461_v46  ;;  %v627_v51 = vsel %vm1856_vm7, %v624_v56, %v621_v7 }
 0x11c   : > { %v455_v19 = vmul.f32 %v1787_v22, %v454_v58  ;;  %v640_v61 = vmul.f32 -0.5, %v1848_v1  ;;  %v1121_v23 = vpop.eup %1120  ;;  %v675_v53 = vsub.f32 %v467_v50, %v627_v51  ;;  %v452_v25 = vmul.f32 0.6931472, %v1117_v36 }
 0x11d   : > { %1128 = vlog2.f32 %v468_v14  ;;  %v1878_v26 = vsub.f32 0.0, %v1852_v33  ;;  %v615_v27 = vmul.f32 %v614_v60, %v1819_v57  ;;  %vm1881_vm10 = vcmp.lt.f32.partialorder %v616_v55, 0.0004427343  ;;  %v1150_v60 = vld [vmem:[%s1285_s22 + $0x50] sm:$0xff] }
 0x11e   : > { %1130 = vrcp.f32 %v325_v62  ;;  %v308_v22 = vsel %vm307_vm5, %v1768_v48, %v306_v37  ;;  %v1123_v2 = vpop.eup %1122  ;;  %v691_v18 = vmul.f32 0.5, %v675_v53  ;;  %v482_v42 = vmul.f32 %v937_v38, %v481_v45 }
 0x11f   : > { %vm1888_vm11 = vcmp.lt.f32.partialorder %v483_v15, 0.0004427343  ;;  %v643_v8 = vand.u32 2147483647, %v1848_v1  ;;  %v628_v57 = vadd.f32 1.0, %v1878_v26  ;;  %v471_v30 = vmul.f32 -0.5, %v1852_v33 }
 0x120   : > { %v612_v29 = vmul.f32 0.6931472, %v1123_v2  ;;  %v1899_v34 = vsel %vm309_vm6, %v310_v16, %v308_v22  ;;  %v299_v24 = vmul.f32 %v1119_v20, %v1813_v3  ;;  %v723_v62 = vmul.f32 %v1113_v32, %v691_v18  ;;  %v1151_v2 = vld [vmem:[%s1285_s22 + $0x68] sm:$0xff] }
 0x121   : > { %v458_v31 = vsel %vm1867_vm9, %v455_v19, %v452_v25  ;;  %v641_v10 = vadd.f32 1.0, %v640_v61  ;;  %1132 = vlog2.f32 %v628_v57  ;;  %v327_v35 = vmax.f32 %v1899_v34, 1e-15 }
 0x122   : > { %v1125_v13 = vpop.eup %1124  ;;  %v618_v21 = vsel %vm1881_vm10, %v615_v27, %v612_v29  ;;  %v301_v48 = vsel %vm300_vm8, %v1813_v3, %v299_v24  ;;  %v303_v16 = vand.u32 2147483648, %v1813_v3  ;;  %v739_v38 = vmul.f32 %v1149_v6, %v723_v62 }
 0x123   : > { %v674_v28 = vsub.f32 %v458_v31, %v618_v21  ;;  %vm1912_vm12 = vcmp.lt.f32.partialorder %v643_v8, 0.0004427343  ;;  %vm302_vm13 = vcmp.eq.f32.partialorder %v1813_v3, 0.0  ;;  %v479_v47 = vmul.f32 0.6931472, %v1125_v13  ;;  %v1152_v13 = vld [vmem:[%s1285_s22 + $0x60] sm:$0xff] }
 0x124   : > { %v631_v63 = vmul.f32 -0.5, %v1878_v26  ;;  %v1918_v9 = vclamps-f32 %v327_v35, 0.9999999  ;;  %v1920_v12 = vsel %vm302_vm13, %v303_v16, %v301_v48  ;;  %v972_v43 = vpack.c.bf16 %v739_v38, %v739_v38 }
 0x125   : > { %v1127_v41 = vpop.eup %1126  ;;  %v690_v11 = vmul.f32 0.5, %v674_v28  ;;  %v472_v17 = vadd.f32 1.0, %v471_v30  ;;  %v326_v32 = vmax.f32 %v1920_v12, 1e-15  ;;  %v642_v46 = vmul.f32 %v641_v10, %v1848_v1  ;;  %v1153_v12 = vld [vmem:[%s1285_s22 + $0x78] sm:$0xff] }
 0x126   : > { %v639_v44 = vmul.f32 0.6931472, %v1127_v41  ;;  %v474_v58 = vand.u32 2147483647, %v1852_v33  ;;  %v495_v3 = vadd.f32 1.0, %v1918_v9  ;;  %1134 = vrcp.f32 %v324_v40 }
 0x127   : > { %v1129_v49 = vpop.eup %1128  ;;  %836 = vst.msk [vmem:[%s1350_s25 + $0x2c] sm:$0xf] %vm824_vm1, %v972_v43  ;;  %v722_v56 = vmul.f32 %v1121_v23, %v690_v11  ;;  %v519_v5 = vsub.f32 0.0, %v1918_v9  ;;  %v1933_v59 = vclamps-f32 %v326_v32, 0.9999999  ;;  %v485_v1 = vsel %vm1888_vm11, %v482_v42, %v479_v47 }
 0x128   : > { %v1131_v37 = vpop.eup %1130  ;;  %v645_v36 = vsel %vm1912_vm12, %v642_v46, %v639_v44  ;;  %v632_v7 = vadd.f32 1.0, %v631_v63  ;;  %1136 = vlog2.f32 %v495_v3  ;;  %v634_v40 = vand.u32 2147483647, %v1878_v26 }
 0x129   : > { %v738_v55 = vmul.f32 %v1150_v60, %v722_v56  ;;  %v677_v39 = vsub.f32 %v485_v1, %v645_v36  ;;  %v655_v14 = vadd.f32 1.0, %v519_v5  ;;  %v470_v4 = vmul.f32 0.6931472, %v1129_v49 }
 0x12a   : > { %v486_v45 = vadd.f32 1.0, %v1933_v59  ;;  %v473_v51 = vmul.f32 %v1852_v33, %v472_v17  ;;  %vm475_vm14 = vcmp.lt.f32.partialorder %v474_v58, 0.0004427343  ;;  %v633_v61 = vmul.f32 %v632_v7, %v1878_v26 }
 0x12b   : > { %v1133_v15 = vpop.eup %1132  ;;  %v971_v20 = vpack.c.bf16 %v738_v55, %v738_v55  ;;  %v693_v50 = vmul.f32 0.5, %v677_v39  ;;  %1138 = vlog2.f32 %v655_v14  ;;  %vm635_vm15 = vcmp.lt.f32.partialorder %v634_v40, 0.0004427343  ;;  %v1154_v40 = vld [vmem:[%s1285_s22 + $0x70] sm:$0xff] }
 0x12c   : > { %v630_v19 = vmul.f32 0.6931472, %v1133_v15  ;;  %v498_v53 = vmul.f32 -0.5, %v1918_v9  ;;  %v518_v25 = vsub.f32 0.0, %v1933_v59  ;;  %v476_v27 = vsel %vm475_vm14, %v473_v51, %v470_v4 }
 0x12d   : > { %835 = vst.msk [vmem:[%s1350_s25 + $0x28] sm:$0xf] %vm824_vm1, %v971_v20  ;;  %v725_v23 = vmul.f32 %v1131_v37, %v693_v50  ;;  %v658_v22 = vmul.f32 -0.5, %v519_v5  ;;  %1140 = vlog2.f32 %v486_v45  ;;  %v501_v24 = vand.u32 2147483647, %v1918_v9 }
 0x12e   : > { %v636_v54 = vsel %vm635_vm15, %v633_v61, %v630_v19  ;;  %v646_v42 = vadd.f32 1.0, %v518_v25  ;;  %1142 = vrcp.f32 %v327_v35  ;;  %v499_v29 = vadd.f32 1.0, %v498_v53 }
 0x12f   : > { %v741_v18 = vmul.f32 %v1151_v2, %v725_v23  ;;  %v676_v33 = vsub.f32 %v476_v27, %v636_v54  ;;  %v659_v30 = vadd.f32 1.0, %v658_v22  ;;  %v661_v62 = vand.u32 2147483647, %v519_v5 }
 0x130   : > { %v1135_v52 = vpop.eup %1134  ;;  %1144 = vlog2.f32 %v646_v42  ;;  %v489_v48 = vmul.f32 -0.5, %v1933_v59  ;;  %v649_v16 = vmul.f32 -0.5, %v518_v25  ;;  %v500_v35 = vmul.f32 %v1918_v9, %v499_v29 }
 0x131   : > { %v974_v26 = vpack.c.bf16 %v741_v18, %v741_v18  ;;  %v692_v8 = vmul.f32 0.5, %v676_v33  ;;  %v660_v38 = vmul.f32 %v659_v30, %v519_v5  ;;  %vm502_vm0 = vcmp.lt.f32.partialorder %v501_v24, 0.0004427343 }
 0x132   : > { %v1137_v57 = vpop.eup %1136  ;;  %vm662_vm2 = vcmp.lt.f32.partialorder %v661_v62, 0.0004427343  ;;  %v490_v43 = vadd.f32 1.0, %v489_v48  ;;  %v650_v11 = vadd.f32 1.0, %v649_v16  ;;  %1146 = vrcp.f32 %v326_v32 }
 0x133   : > { %838 = vst.msk [vmem:[%s1350_s25 + $0x34] sm:$0xf] %vm824_vm1, %v974_v26  ;;  %v724_v34 = vmul.f32 %v1135_v52, %v692_v8  ;;  %v497_v31 = vmul.f32 0.6931472, %v1137_v57  ;;  %v492_v17 = vand.u32 2147483647, %v1933_v59 }
 0x134   : > { %v652_v9 = vand.u32 2147483647, %v518_v25  ;;  %v491_v56 = vmul.f32 %v1933_v59, %v490_v43  ;;  %v651_v37 = vmul.f32 %v650_v11, %v518_v25 }
 0x135   : > { %v1139_v10 = vpop.eup %1138  ;;  %v740_v21 = vmul.f32 %v1152_v13, %v724_v34  ;;  %v503_v47 = vsel %vm502_vm0, %v500_v35, %v497_v31  ;;  %vm493_vm3 = vcmp.lt.f32.partialorder %v492_v17, 0.0004427343 }
 0x136   : > { %v657_v6 = vmul.f32 0.6931472, %v1139_v10  ;;  %vm653_vm4 = vcmp.lt.f32.partialorder %v652_v9, 0.0004427343 }
 0x137   : > { %v973_v28 = vpack.c.bf16 %v740_v21, %v740_v21  ;;  %v1141_v0 = vpop.eup %1140 }
 0x138   : > { %v663_v63 = vsel %vm662_vm2, %v660_v38, %v657_v6  ;;  %v1143_v44 = vpop.eup %1142  ;;  %v488_v58 = vmul.f32 0.6931472, %v1141_v0 }
 0x139   : > { %837 = vst.msk [vmem:[%s1350_s25 + $0x30] sm:$0xf] %vm824_vm1, %v973_v28  ;;  %v679_v41 = vsub.f32 %v503_v47, %v663_v63 }
 0x13a   : > { %v1145_v3 = vpop.eup %1144  ;;  %v494_v1 = vsel %vm493_vm3, %v491_v56, %v488_v58 }
 0x13b   : > { %v695_v46 = vmul.f32 0.5, %v679_v41  ;;  %v648_v5 = vmul.f32 0.6931472, %v1145_v3 }
 0x13c   : > { %v1147_v39 = vpop.eup %1146 }
 0x13d   : > { %v727_v49 = vmul.f32 %v1143_v44, %v695_v46  ;;  %v654_v36 = vsel %vm653_vm4, %v651_v37, %v648_v5 }
 0x13e   : > { %v678_v7 = vsub.f32 %v494_v1, %v654_v36 }
 0x13f   : > { %v743_v32 = vmul.f32 %v1153_v12, %v727_v49 }
 0x140   : > { %v694_v55 = vmul.f32 0.5, %v678_v7 }
 0x141   : > { %v976_v60 = vpack.c.bf16 %v743_v32, %v743_v32 }
 0x142   : > { %v726_v59 = vmul.f32 %v1147_v39, %v694_v55 }
 0x143   : > { %840 = vst.msk [vmem:[%s1350_s25 + $0x3c] sm:$0xf] %vm824_vm1, %v976_v60 }
 0x144   : > { %v742_v14 = vmul.f32 %v1154_v40, %v726_v59 }
 0x146   : > { %v975_v4 = vpack.c.bf16 %v742_v14, %v742_v14 }
 0x148   : > { %839 = vst.msk [vmem:[%s1350_s25 + $0x38] sm:$0xf] %vm824_vm1, %v975_v4 }
 0x149   : > { %1168 = shalt.err (!%p1165_p3)
}
 0x14a   : > { %s1169_s11 = scalar_lea.hbm %s1970_s30, 1024  ;;  %s1173_s18 = scalar_lea.hbm %s2020_s1, 3072 }
 0x14b   : > { %p1170_p4 = scmp.ne.s32.totalorder %s1970_s30, %s1169_s11  ;;  %p1174_p9 = scmp.lt.u32.totalorder %s1970_s30, %s2020_s1 }
 0x14c   : > { %p1175_p10 = scmp.lt.u32.totalorder %s1173_s18, %s1169_s11  ;;  %p1177_p12 = scmp.lt.u32.totalorder %s1169_s11, %s1970_s30 }
 0x14d   : > { %p1171_p7 = pnand %p1170_p4, %p1271_p5 }
 0x14e   : > { %p1176_p11 = por %p1175_p10, %p1174_p9 }
 0x14f   : > { %p1172_p8 = pneg %p1171_p7 }
 0x150   : > { %p1178_p13 = por %p1177_p12, %p1176_p11 }
 0x152   : > { %p1179_p0 = pnand %p1178_p13, %p1172_p8 }
 0x154   : > { %1182 = shalt.err (!%p1179_p0)
}
 0x155   : > { %s1221_s21 = smov 64   ;;  %s1222_s22 = smov 4  }
 0x156   : > { %978 = dma.vmem_to_hbm [thread:$0]  (%p1271_p5), %s1972_s27, 1024, %s1970_s30, %s1978_s2, %s1221_s21, %s1221_s21, %s1222_s22  }
 0x157 PF: > { %p984_p1 = scmp.ge.s32.totalorder %s1217_s9, 2  ;;  %s870_s23 = sand.u32 1, %s1205_s6  }
 0x158   : > { %s871_s24 = scalar_lea.sflag [#allocation3], %s870_s23 }
 0x159   : > { %p981_p2 = pnand %p984_p1, %p1275_p6 }
 0x15b   : > { %1200 = dma.done.wait (!%p981_p2), %s871_s24, 1024  }
 0x15c   : > { %1202 = vsyncadd (!%p981_p2), %s871_s24, 4294966272  ;;  %p11_p3 = scmp.ge.s32.totalorder %s1258_s12, 5   ;;  %s2073_s6 = smov %s1209_s7 }
 0x15d   : > { %s2074_s7 = smov %s1213_s8  ;;  %s2075_s8 = smov %s1269_s15 }
 0x15e   : > { %s2076_s9 = smov %s1258_s12  ;;  %13 = sbr.rel (!%p11_p3) target bundleno = 3 (0x3), region = 59 }
 0x165   :  { %876 = vsyncpa [#allocation3], 1 }
 0x166   :  { %878 = vsyncpa [#allocation3 + $0x1], 1 }

</bundles_post_ra>
